<compile_context>
chip_gen: v6e
topology: v6e:2x2x1
jax: 0.10.0
libtpu: 0.0.40
codegen_flags: <defaults>
</compile_context>

<pallas_src>
import jax
import jax.numpy as jnp
from jax.experimental import pallas as pl
from jax.experimental.pallas import tpu as pltpu


def _critic_kernel(s_ref, a_ref, w1s_ref, w1a_ref, b1_ref, w2_ref, b2_ref,
                   w3_ref, b3_ref, o_ref):
    # Compute dtype = weight dtype (bf16 fast path or f32); activations are
    # cast in-kernel so no standalone HBM cast pass is needed in the wrapper.
    cd = w1s_ref.dtype
    s = s_ref[...].astype(cd)                      # (S,  tm)
    a = a_ref[...].astype(cd)                      # (A,  tm)

    # Layer 1 (transposed): h1^T = W1s^T @ s^T + W1a^T @ a^T + b1  -> (H1, tm)
    h1 = (jnp.dot(w1s_ref[...], s, preferred_element_type=jnp.float32)
          + jnp.dot(w1a_ref[...], a, preferred_element_type=jnp.float32)
          + b1_ref[...])
    h1 = jnp.maximum(h1, 0.0)                      # ReLU in f32

    # Layer 2: h2^T = W2^T @ h1^T + b2  -> (H2, tm)
    h2 = jnp.dot(w2_ref[...], h1.astype(cd),
                 preferred_element_type=jnp.float32) + b2_ref[...]
    h2 = jnp.maximum(h2, 0.0)                      # ReLU in f32

    # Layer 3: out^T = W3^T @ h2^T + b3 -> (1, tm), lane-dense store.
    out = jnp.dot(w3_ref[...], h2.astype(cd),
                  preferred_element_type=jnp.float32) + b3_ref[0, 0]
    o_ref[...] = out.astype(o_ref.dtype)


def _round_up(x, m):
    return ((x + m - 1) // m) * m


def prepare_critic_params(params, num_state, *, compute_dtype=jnp.float32):
    """One-time conversion of (in, out)-layout params into the kernel layout:
    split w1 into state/action halves, transpose all weights (out, in),
    cast weights to compute_dtype (bf16 recommended on v5e/v6e/v7x), keep
    biases f32 as (features, 1) columns; b3 is a (1, 1) SMEM scalar."""
    w1 = params["w1"].astype(compute_dtype)        # (S+A, H1)
    return {
        "w1s_t": w1[:num_state, :].T,              # (H1, S)
        "w1a_t": w1[num_state:, :].T,              # (H1, A)
        "b1": params["b1"].astype(jnp.float32).reshape(-1, 1),   # (H1, 1)
        "w2_t": params["w2"].astype(compute_dtype).T,            # (H2, H1)
        "b2": params["b2"].astype(jnp.float32).reshape(-1, 1),   # (H2, 1)
        "w3_t": params["w3"].astype(compute_dtype).T,            # (OUT, H2)
        "b3": params["b3"].astype(jnp.float32).reshape(1, -1)[:, :1],  # (1, 1)
    }


def critic_forward(state, action, kparams, *, block_rows=1024):
    """Critic forward pass. state: (B, S), action: (B, A) -> (B, 1).
    `kparams` comes from prepare_critic_params (split/transposed/cast once)."""
    B, S = state.shape
    _, A = action.shape

    w1s_t, w1a_t = kparams["w1s_t"], kparams["w1a_t"]
    b1, w2_t, b2, w3_t, b3 = (kparams["b1"], kparams["w2_t"], kparams["b2"],
                              kparams["w3_t"], kparams["b3"])
    H1 = w1s_t.shape[0]
    H2 = w2_t.shape[0]
    OUT = w3_t.shape[0]

    # Batch lives on the lane axis: pass activations transposed.
    state_t = state.T                               # (S, B)
    action_t = action.T                             # (A, B)

    # Lane tile: full batch for small B (block == array dims, no padding);
    # otherwise lane-aligned to 128 and capped at ceil(B/2) so there are at
    # least 2 grid steps for v7x's two TensorCores.
    if B <= 128:
        tm = B
    else:
        half = -(-B // 2)
        tm = min(_round_up(block_rows, 128), _round_up(half, 128))
    grid = (-(-B // tm),)                           # cdiv; partial last block OK

    w_itemsize = jnp.dtype(w1s_t.dtype).itemsize
    x_itemsize = jnp.dtype(state.dtype).itemsize
    flops = 2 * B * ((S + A) * H1 + H1 * H2 + H2 * OUT)
    bytes_accessed = (
        x_itemsize * B * (S + A)                            # activations in
        + w_itemsize * ((S + A) * H1 + H1 * H2 + H2 * OUT)  # weights
        + 4 * (H1 + H2 + OUT)                               # biases (f32)
        + 4 * B * OUT)                                      # output (f32)

    out_t = pl.pallas_call(
        _critic_kernel,
        out_shape=jax.ShapeDtypeStruct((OUT, B), jnp.float32),
        grid_spec=pltpu.PrefetchScalarGridSpec(
            num_scalar_prefetch=0,
            grid=grid,
            in_specs=[
                pl.BlockSpec((S, tm), lambda i: (0, i)),     # state^T lanes
                pl.BlockSpec((A, tm), lambda i: (0, i)),     # action^T lanes
                pl.BlockSpec((H1, S), lambda i: (0, 0)),     # w1^T (state part)
                pl.BlockSpec((H1, A), lambda i: (0, 0)),     # w1^T (action part)
                pl.BlockSpec((H1, 1), lambda i: (0, 0)),     # b1 column
                pl.BlockSpec((H2, H1), lambda i: (0, 0)),    # w2^T
                pl.BlockSpec((H2, 1), lambda i: (0, 0)),     # b2 column
                pl.BlockSpec((OUT, H2), lambda i: (0, 0)),   # w3^T
                pl.BlockSpec(memory_space=pltpu.MemorySpace.SMEM),  # b3 scalar
            ],
            out_specs=pl.BlockSpec((OUT, tm), lambda i: (0, i)),
        ),
        compiler_params=pltpu.CompilerParams(
            dimension_semantics=("parallel",)),
        cost_estimate=pl.CostEstimate(
            flops=flops, transcendentals=0, bytes_accessed=bytes_accessed),
    )(state_t, action_t, w1s_t, w1a_t, b1, w2_t, b2, w3_t, b3)

    return out_t.T                                  # (B, OUT)


def init_critic_params(key, num_state_action, num_action_value=1, init_w=0.03):
    """Mimics PyTorch defaults (uniform +/- 1/sqrt(fan_in)) for linear1/linear2
    and uniform(-init_w, init_w) for linear3. Weights stored as (in, out)."""
    k1, k2, k3, k4, k5, k6 = jax.random.split(key, 6)

    def unif(k, shape, bound):
        return jax.random.uniform(k, shape, jnp.float32, -bound, bound)

    b1_bound = 1.0 / jnp.sqrt(jnp.float32(num_state_action))
    b2_bound = 1.0 / jnp.sqrt(jnp.float32(64))

    return {
        "w1": unif(k1, (num_state_action, 64), b1_bound),
        "b1": unif(k2, (1, 64), b1_bound),
        "w2": unif(k3, (64, 128), b2_bound),
        "b2": unif(k4, (1, 128), b2_bound),
        "w3": unif(k5, (128, num_action_value), init_w),
        "b3": unif(k6, (1, num_action_value), init_w),
    }


def critic_ref(state, action, params):
    """Plain-JAX reference for correctness checking (standard layout params)."""
    x = jnp.concatenate([state, action], axis=1).astype(jnp.float32)
    h1 = jnp.maximum(x @ params["w1"] + params["b1"], 0.0)
    h2 = jnp.maximum(h1 @ params["w2"] + params["b2"], 0.0)
    return h2 @ params["w3"] + params["b3"]


if __name__ == "__main__":
    key = jax.random.PRNGKey(0)
    k_state, k_action, k_params = jax.random.split(key, 3)

    batch = 8
    num_state = 12
    num_action = 4
    num_state_action = num_state + num_action  # Linear1 input dim

    state = jax.random.normal(k_state, (batch, num_state), jnp.float32)
    action = jax.random.normal(k_action, (batch, num_action), jnp.float32)
    params = init_critic_params(k_params, num_state_action, num_action_value=1)

    ref = critic_ref(state, action, params)

    # f32 path (exact-ish match to the reference).
    kparams_f32 = prepare_critic_params(params, num_state,
                                        compute_dtype=jnp.float32)
    out = jax.block_until_ready(critic_forward(state, action, kparams_f32))
    assert out.shape == (batch, 1), out.shape
    assert jnp.allclose(out, ref, atol=1e-5, rtol=1e-5), "f32 mismatch vs reference"

    # bf16-operand path (fast MXU path on v5e/v6e/v7x, f32 accumulation;
    # activations cast in-kernel, no wrapper HBM cast pass).
    kparams_bf16 = prepare_critic_params(params, num_state,
                                         compute_dtype=jnp.bfloat16)
    out_bf16 = jax.block_until_ready(critic_forward(state, action, kparams_bf16))
    assert out_bf16.shape == (batch, 1), out_bf16.shape
    assert jnp.allclose(out_bf16, ref, atol=1e-1, rtol=1e-1), "bf16 mismatch vs reference"

    print("KERNEL_OK")
</pallas_src>

<mosaic_0001>
module attributes {stable_mosaic.version = 11 : i64} {
  func.func @_critic_kernel(%arg0: i32, %arg1: memref<12x8xf32, #tpu.memory_space<vmem>>, %arg2: memref<4x8xf32, #tpu.memory_space<vmem>>, %arg3: memref<64x12xf32, #tpu.memory_space<vmem>>, %arg4: memref<64x4xf32, #tpu.memory_space<vmem>>, %arg5: memref<64x1xf32, #tpu.memory_space<vmem>>, %arg6: memref<128x64xf32, #tpu.memory_space<vmem>>, %arg7: memref<128x1xf32, #tpu.memory_space<vmem>>, %arg8: memref<1x128xf32, #tpu.memory_space<vmem>>, %arg9: memref<1x1xf32, #tpu.memory_space<smem>>, %arg10: memref<1x8xf32, #tpu.memory_space<vmem>>) attributes {dimension_semantics = [#tpu.dimension_semantics<parallel>], iteration_bounds = array<i64: 1>, scalar_prefetch = 0 : i64, scratch_operands = 0 : i64, tpu.core_type = #tpu.core_type<tc>, window_params = [{transform_indices = @transform_0, window_bounds = array<i64: 12, 8>}, {transform_indices = @transform_1, window_bounds = array<i64: 4, 8>}, {pipeline_mode = #tpu.pipeline_mode<synchronous>, transform_indices = @transform_2, window_bounds = array<i64: 64, 12>}, {pipeline_mode = #tpu.pipeline_mode<synchronous>, transform_indices = @transform_3, window_bounds = array<i64: 64, 4>}, {pipeline_mode = #tpu.pipeline_mode<synchronous>, transform_indices = @transform_4, window_bounds = array<i64: 64, 1>}, {pipeline_mode = #tpu.pipeline_mode<synchronous>, transform_indices = @transform_5, window_bounds = array<i64: 128, 64>}, {pipeline_mode = #tpu.pipeline_mode<synchronous>, transform_indices = @transform_6, window_bounds = array<i64: 128, 1>}, {pipeline_mode = #tpu.pipeline_mode<synchronous>, transform_indices = @transform_7, window_bounds = array<i64: 1, 128>}, {transform_indices = @transform_8, window_bounds = array<i64: 1, 1>}, {transform_indices = @transform_9, window_bounds = array<i64: 1, 8>}]} {
    %c0 = arith.constant 0 : index
    %c0_0 = arith.constant 0 : index
    %0 = vector.load %arg1[%c0, %c0_0] : memref<12x8xf32, #tpu.memory_space<vmem>>, vector<12x8xf32>
    %c0_1 = arith.constant 0 : index
    %c0_2 = arith.constant 0 : index
    %1 = vector.load %arg2[%c0_1, %c0_2] : memref<4x8xf32, #tpu.memory_space<vmem>>, vector<4x8xf32>
    %c0_3 = arith.constant 0 : index
    %c0_4 = arith.constant 0 : index
    %2 = vector.load %arg3[%c0_3, %c0_4] : memref<64x12xf32, #tpu.memory_space<vmem>>, vector<64x12xf32>
    %cst = arith.constant dense<0.000000e+00> : vector<64x8xf32>
    %3 = tpu.matmul %2, %0, %cst {dimension_numbers = #tpu.dot_dimension_numbers<[1], [0], [0], [1], [0, 0, 1, 1], [], []>} : vector<64x12xf32>, vector<12x8xf32>, vector<64x8xf32> -> vector<64x8xf32>
    %c0_5 = arith.constant 0 : index
    %c0_6 = arith.constant 0 : index
    %4 = vector.load %arg4[%c0_5, %c0_6] : memref<64x4xf32, #tpu.memory_space<vmem>>, vector<64x4xf32>
    %cst_7 = arith.constant dense<0.000000e+00> : vector<64x8xf32>
    %5 = tpu.matmul %4, %1, %cst_7 {dimension_numbers = #tpu.dot_dimension_numbers<[1], [0], [0], [1], [0, 0, 1, 1], [], []>} : vector<64x4xf32>, vector<4x8xf32>, vector<64x8xf32> -> vector<64x8xf32>
    %6 = arith.addf %3, %5 : vector<64x8xf32>
    %c0_8 = arith.constant 0 : index
    %c0_9 = arith.constant 0 : index
    %7 = vector.load %arg5[%c0_8, %c0_9] : memref<64x1xf32, #tpu.memory_space<vmem>>, vector<64x1xf32>
    %8 = vector.broadcast %7 : vector<64x1xf32> to vector<64x8xf32>
    %9 = arith.addf %6, %8 : vector<64x8xf32>
    %cst_10 = arith.constant 0.000000e+00 : f32
    %10 = vector.broadcast %cst_10 : f32 to vector<64x8xf32>
    %11 = arith.maximumf %9, %10 : vector<64x8xf32>
    %c0_11 = arith.constant 0 : index
    %c0_12 = arith.constant 0 : index
    %12 = vector.load %arg6[%c0_11, %c0_12] : memref<128x64xf32, #tpu.memory_space<vmem>>, vector<128x64xf32>
    %cst_13 = arith.constant dense<0.000000e+00> : vector<128x8xf32>
    %13 = tpu.matmul %12, %11, %cst_13 {dimension_numbers = #tpu.dot_dimension_numbers<[1], [0], [0], [1], [0, 0, 1, 1], [], []>} : vector<128x64xf32>, vector<64x8xf32>, vector<128x8xf32> -> vector<128x8xf32>
    %c0_14 = arith.constant 0 : index
    %c0_15 = arith.constant 0 : index
    %14 = vector.load %arg7[%c0_14, %c0_15] : memref<128x1xf32, #tpu.memory_space<vmem>>, vector<128x1xf32>
    %15 = vector.broadcast %14 : vector<128x1xf32> to vector<128x8xf32>
    %16 = arith.addf %13, %15 : vector<128x8xf32>
    %cst_16 = arith.constant 0.000000e+00 : f32
    %17 = vector.broadcast %cst_16 : f32 to vector<128x8xf32>
    %18 = arith.maximumf %16, %17 : vector<128x8xf32>
    %c0_17 = arith.constant 0 : index
    %c0_18 = arith.constant 0 : index
    %19 = vector.load %arg8[%c0_17, %c0_18] : memref<1x128xf32, #tpu.memory_space<vmem>>, vector<1x128xf32>
    %cst_19 = arith.constant dense<0.000000e+00> : vector<1x8xf32>
    %20 = tpu.matmul %19, %18, %cst_19 {dimension_numbers = #tpu.dot_dimension_numbers<[1], [0], [0], [1], [0, 0, 1, 1], [], []>} : vector<1x128xf32>, vector<128x8xf32>, vector<1x8xf32> -> vector<1x8xf32>
    %c0_20 = arith.constant 0 : index
    %c0_21 = arith.constant 0 : index
    %21 = memref.load %arg9[%c0_20, %c0_21] : memref<1x1xf32, #tpu.memory_space<smem>>
    %22 = vector.broadcast %21 : f32 to vector<1x8xf32>
    %23 = arith.addf %20, %22 : vector<1x8xf32>
    %c0_22 = arith.constant 0 : index
    %c0_23 = arith.constant 0 : index
    %24 = vector.load %arg10[%c0_22, %c0_23] : memref<1x8xf32, #tpu.memory_space<vmem>>, vector<1x8xf32>
    tpu.vector_store %arg10[%c0_22, %c0_23], %23 {strides = array<i32>} : memref<1x8xf32, #tpu.memory_space<vmem>>, vector<1x8xf32>,
    return
  }
  func.func @transform_0(%arg0: i32) -> (i32, i32) {
    %c0_i32 = arith.constant 0 : i32
    %c0_i32_0 = arith.constant 0 : i32
    return %c0_i32, %arg0 : i32, i32
  }
  func.func @transform_1(%arg0: i32) -> (i32, i32) {
    %c0_i32 = arith.constant 0 : i32
    %c0_i32_0 = arith.constant 0 : i32
    return %c0_i32, %arg0 : i32, i32
  }
  func.func @transform_2(%arg0: i32) -> (i32, i32) {
    %c0_i32 = arith.constant 0 : i32
    %c0_i32_0 = arith.constant 0 : i32
    %c0_i32_1 = arith.constant 0 : i32
    return %c0_i32, %c0_i32_0 : i32, i32
  }
  func.func @transform_3(%arg0: i32) -> (i32, i32) {
    %c0_i32 = arith.constant 0 : i32
    %c0_i32_0 = arith.constant 0 : i32
    %c0_i32_1 = arith.constant 0 : i32
    return %c0_i32, %c0_i32_0 : i32, i32
  }
  func.func @transform_4(%arg0: i32) -> (i32, i32) {
    %c0_i32 = arith.constant 0 : i32
    %c0_i32_0 = arith.constant 0 : i32
    %c0_i32_1 = arith.constant 0 : i32
    return %c0_i32, %c0_i32_0 : i32, i32
  }
  func.func @transform_5(%arg0: i32) -> (i32, i32) {
    %c0_i32 = arith.constant 0 : i32
    %c0_i32_0 = arith.constant 0 : i32
    %c0_i32_1 = arith.constant 0 : i32
    return %c0_i32, %c0_i32_0 : i32, i32
  }
  func.func @transform_6(%arg0: i32) -> (i32, i32) {
    %c0_i32 = arith.constant 0 : i32
    %c0_i32_0 = arith.constant 0 : i32
    %c0_i32_1 = arith.constant 0 : i32
    return %c0_i32, %c0_i32_0 : i32, i32
  }
  func.func @transform_7(%arg0: i32) -> (i32, i32) {
    %c0_i32 = arith.constant 0 : i32
    %c0_i32_0 = arith.constant 0 : i32
    %c0_i32_1 = arith.constant 0 : i32
    return %c0_i32, %c0_i32_0 : i32, i32
  }
  func.func @transform_8(%arg0: i32) -> (i32, i32) {
    %c0_i32 = arith.constant 0 : i32
    %c0_i32_0 = arith.constant 0 : i32
    %c0_i32_1 = arith.constant 0 : i32
    return %c0_i32, %c0_i32_0 : i32, i32
  }
  func.func @transform_9(%arg0: i32) -> (i32, i32) {
    %c0_i32 = arith.constant 0 : i32
    %c0_i32_0 = arith.constant 0 : i32
    return %c0_i32, %arg0 : i32, i32
  }
}

</mosaic_0001>

<bundles_post_ra>
// kernel: tpu_custom_call.1
= control target key start
LH: loop header
LB: loop body
LE: loop exit
PB: predicated region body
PF: predicated region fallthrough
CT: control target
= control target key end

     0   :  { %vm78_vm0 = vcmask 1043456   ;;  %vm53_vm1 = vcmask 31744   ;;  %vm187_vm2 = vcmask 97280   ;;  %v1022_v11 = vmov 0   ;;  %s1323_s0 = inlined_call_operand.vmem [shape: f32[12,8], index: 0, kind: input, shape index: {}]   ;;  %s1324_s1 = inlined_call_operand.vmem [shape: f32[4,8], index: 1, kind: input, shape index: {}]   ;;  %s1325_s2 = inlined_call_operand.vmem [shape: f32[64,12], index: 2, kind: input, shape index: {}]   ;;  %s1326_s3 = inlined_call_operand.vmem [shape: f32[64,4], index: 3, kind: input, shape index: {}]   ;;  %s1327_s4 = inlined_call_operand.vmem [shape: f32[64,1], index: 4, kind: input, shape index: {}]   ;;  %s1328_s5 = inlined_call_operand.vmem [shape: f32[128,64], index: 5, kind: input, shape index: {}]   ;;  %s1329_s6 = inlined_call_operand.vmem [shape: f32[128,1], index: 6, kind: input, shape index: {}]   ;;  %s1330_s7 = inlined_call_operand.vmem [shape: f32[1,128], index: 7, kind: input, shape index: {}]   ;;  %s1331_s8 = inlined_call_operand.<no memory space> [shape: f32[1,1], index: 8, kind: input, shape index: {}]   ;;  %s1332_s9 = inlined_call_operand.hbm [shape: f32[1,8], index: 9, kind: output, shape index: {}]  }
   0x1   :  { %v36_v0 = vld [vmem:[%s1324_s1] sm:$0xf]  ;;  %v35_v1 = vld [vmem:[%s1323_s0 + $0x8] sm:$0xf]  ;;  %v47_v6 = vld [vmem:[%s1326_s3 + $0x10] sm:$0xff]  ;;  %998 = vset.pattern.permute.xlu0 %v1022_v11  ;;  %999 = vset.pattern.permute.xlu1 %v1022_v11 }
   0x2   :  { %v45_v2 = vld [vmem:[%s1326_s3] sm:$0xff]  ;;  %889 = vmatprep.subr.msk.mxu0 %vm78_vm0, %v36_v0  ;;  %903 = vmatprep.subr.msk.mxu1 %vm78_vm0, %v35_v1  ;;  %v46_v3 = vld [vmem:[%s1326_s3 + $0x8] sm:$0xff]  ;;  %v48_v8 = vld [vmem:[%s1326_s3 + $0x18] sm:$0xff] }
   0x3   :  { %v34_v4 = vld [vmem:[%s1323_s0] sm:$0xff]  ;;  %890 = vmatpush3.msk.msra.mxu0 %vm78_vm0, %v36_v0  ;;  %891 = vmatprep.mubr.msk.f32.mxu0 %vm53_vm1, %v45_v2  ;;  %v38_v7 = vld [vmem:[%s1325_s2 + $0x8] sm:$0xff]  ;;  %v39_v9 = vld [vmem:[%s1325_s2 + $0x10] sm:$0xff] }
   0x4   :  { %v37_v5 = vld [vmem:[%s1325_s2] sm:$0xff]  ;;  %904 = vmatpush3.msk.msra.mxu1 %vm78_vm0, %v35_v1  ;;  %892 = vmatmul.mubr.msk.f32.vlgmr.msra.gmra.mxu0 %vm53_vm1, %v46_v3  ;;  %v327_v12 = vld [vmem:[%s1327_s4 + $0x38] sm:$0xff]  ;;  %v325_v14 = vld [vmem:[%s1327_s4 + $0x28] sm:$0xff] }
   0x5   :  { %905 = vmatprep.subr.mxu1 %v34_v4  ;;  %907 = vmatprep.mubr.msk.f32.mxu1 %vm187_vm2, %v37_v5  ;;  %v49_v10 = vld [vmem:[%s1326_s3 + $0x20] sm:$0xff]  ;;  %v40_v13 = vld [vmem:[%s1325_s2 + $0x18] sm:$0xff]  ;;  %v50_v15 = vld [vmem:[%s1326_s3 + $0x28] sm:$0xff] }
   0x6   :  { %906 = vmatpush3.msra.mxu1 %v34_v4  ;;  %894 = vmatprep.mubr.msk.f32.mxu0 %vm53_vm1, %v47_v6  ;;  %v41_v16 = vld [vmem:[%s1325_s2 + $0x20] sm:$0xff]  ;;  %v51_v17 = vld [vmem:[%s1326_s3 + $0x30] sm:$0xff]  ;;  %v42_v19 = vld [vmem:[%s1325_s2 + $0x28] sm:$0xff] }
   0x7   :  { %908 = vmatmul.mubr.msk.f32.vlgmr.msra.gmra.mxu1 %vm187_vm2, %v38_v7  ;;  %365 = vperm.xlu0 %998, %v327_v12   ;;  %v326_v18 = vld [vmem:[%s1327_s4 + $0x30] sm:$0xff]  ;;  %v324_v20 = vld [vmem:[%s1327_s4 + $0x20] sm:$0xff]  ;;  %v52_v21 = vld [vmem:[%s1326_s3 + $0x38] sm:$0xff] }
   0x8   :  { %895 = vmatmul.mubr.msk.f32.gmra.mxu0 %vm53_vm1, %v48_v8  ;;  %910 = vmatprep.mubr.msk.f32.mxu1 %vm187_vm2, %v39_v9  ;;  %v43_v22 = vld [vmem:[%s1325_s2 + $0x30] sm:$0xff]  ;;  %v323_v23 = vld [vmem:[%s1327_s4 + $0x18] sm:$0xff] }
   0x9   :  { %897 = vmatprep.mubr.msk.f32.mxu0 %vm53_vm1, %v49_v10  ;;  %355 = vperm.xlu1 %999, %v325_v14  }
   0xb   :  { %911 = vmatmul.mubr.msk.f32.gmra.mxu1 %vm187_vm2, %v40_v13  ;;  %360 = vperm.xlu0 %998, %v326_v18  }
   0xc   :  { %898 = vmatmul.mubr.msk.f32.gmra.mxu0 %vm53_vm1, %v50_v15  ;;  %913 = vmatprep.mubr.msk.f32.mxu1 %vm187_vm2, %v41_v16 }
   0xd   :  { %900 = vmatprep.mubr.msk.f32.mxu0 %vm53_vm1, %v51_v17  ;;  %350 = vperm.xlu1 %999, %v324_v20  }
   0xf   :  { %914 = vmatmul.mubr.msk.f32.gmra.mxu1 %vm187_vm2, %v42_v19 }
  0x10   :  { %15 = vsyncpa [#allocation4], 0  ;;  %901 = vmatmul.mubr.msk.f32.gmra.mxu0 %vm53_vm1, %v52_v21  ;;  %916 = vmatprep.mubr.msk.f32.mxu1 %vm187_vm2, %v43_v22  ;;  %v44_v24 = vld [vmem:[%s1325_s2 + $0x38] sm:$0xff]  ;;  %v322_v25 = vld [vmem:[%s1327_s4 + $0x10] sm:$0xff]  ;;  %vm496_vm3 = vcmask 523264   ;;  %vm1024_vm4 = vmmov 0  }
  0x11   :  { %345 = vperm.xlu0 %998, %v323_v23   ;;  %v321_v26 = vld [vmem:[%s1327_s4 + $0x8] sm:$0xff]  ;;  %340 = vperm.xlu1 %999, %v322_v25   ;;  %v320_v27 = vld [vmem:[%s1327_s4] sm:$0xff]  ;;  %v415_v28 = vld [vmem:[%s1329_s6 + $0x78] sm:$0xff]  ;;  %s1025_s25 = smov [#allocation3]   ;;  %vm779_vm5 = vcmask 57344  }
  0x12   :  { %v414_v29 = vld [vmem:[%s1329_s6 + $0x70] sm:$0xff]  ;;  %v413_v30 = vld [vmem:[%s1329_s6 + $0x68] sm:$0xff]  ;;  %v412_v31 = vld [vmem:[%s1329_s6 + $0x60] sm:$0xff]  ;;  %s787_s26 = sshll.u32 %s1025_s25, 4  ;;  %s788_s26 = int_to_ptr.vmem [resolvable:$true] %s787_s26 }
  0x13   :  { %917 = vmatmul.mubr.msk.f32.gmra.mxu1 %vm187_vm2, %v44_v24  ;;  %v411_v32 = vld [vmem:[%s1329_s6 + $0x58] sm:$0xff]  ;;  %v410_v33 = vld [vmem:[%s1329_s6 + $0x50] sm:$0xff]  ;;  %v409_v34 = vld [vmem:[%s1329_s6 + $0x48] sm:$0xff]  ;;  %s1000_s27 = scalar_lea.vmem %s788_s26, 16  ;;  %s1004_s28 = scalar_lea.vmem %s788_s26, 32 }
  0x14   :  { %v408_v35 = vld [vmem:[%s1329_s6 + $0x40] sm:$0xff]  ;;  %v407_v36 = vld [vmem:[%s1329_s6 + $0x38] sm:$0xff]  ;;  %v406_v37 = vld [vmem:[%s1329_s6 + $0x30] sm:$0xff]  ;;  %p1001_p0 = scmp.ne.s32.totalorder %s788_s26, %s1000_s27  ;;  %p1005_p1 = scmp.lt.s32.totalorder %s788_s26, %s788_s26 }
  0x15   :  { %335 = vperm.xlu0 %998, %v321_v26   ;;  %330 = vperm.xlu1 %999, %v320_v27   ;;  %v405_v38 = vld [vmem:[%s1329_s6 + $0x28] sm:$0xff]  ;;  %v404_v39 = vld [vmem:[%s1329_s6 + $0x20] sm:$0xff]  ;;  %v403_v40 = vld [vmem:[%s1329_s6 + $0x18] sm:$0xff]  ;;  %p1006_p2 = scmp.lt.s32.totalorder %s1004_s28, %s1000_s27 }
  0x16   :  { %v402_v41 = vld [vmem:[%s1329_s6 + $0x10] sm:$0xff]  ;;  %v401_v42 = vld [vmem:[%s1329_s6 + $0x8] sm:$0xff]  ;;  %v400_v43 = vld [vmem:[%s1329_s6] sm:$0xff] }
  0x17   :  { %v384_v44 = vld [vmem:[%s1328_s5] sm:$0xff]  ;;  %p1007_p3 = por %p1006_p2, %p1005_p1 }
  0x18   :  { %935 = vmatprep.mubr.msk.f32.mxu0 %vm496_vm3, %v384_v44  ;;  %v1023_v44 = vmov 0.0  }
  0x19   :  { %493 = vperm.xlu0 %998, %v415_v28   ;;  %488 = vperm.xlu1 %999, %v414_v29   ;;  %v385_v29 = vld [vmem:[%s1328_s5 + $0x8] sm:$0xff]  ;;  %p1008_p4 = pnand %p1007_p3, %p1001_p0 }
  0x1a   :  { %959 = vmatprep.subr.mxu1 %v1023_v44  ;;  %991 = vmatprep.mubr.msk.f32.mxu1 %vm1024_vm4, %v1023_v44 }
  0x1d   :  { %483 = vperm.xlu0 %998, %v413_v30   ;;  %478 = vperm.xlu1 %999, %v412_v31   ;;  %v386_v30 = vld [vmem:[%s1328_s5 + $0x10] sm:$0xff]  ;;  %v387_v31 = vld [vmem:[%s1328_s5 + $0x18] sm:$0xff] }
  0x21   :  { %473 = vperm.xlu0 %998, %v411_v32   ;;  %468 = vperm.xlu1 %999, %v410_v33   ;;  %v388_v32 = vld [vmem:[%s1328_s5 + $0x20] sm:$0xff]  ;;  %v389_v33 = vld [vmem:[%s1328_s5 + $0x28] sm:$0xff] }
  0x25   :  { %463 = vperm.xlu0 %998, %v409_v34   ;;  %458 = vperm.xlu1 %999, %v408_v35   ;;  %v390_v34 = vld [vmem:[%s1328_s5 + $0x30] sm:$0xff]  ;;  %v391_v35 = vld [vmem:[%s1328_s5 + $0x38] sm:$0xff] }
  0x29   :  { %453 = vperm.xlu0 %998, %v407_v36   ;;  %448 = vperm.xlu1 %999, %v406_v37   ;;  %v392_v36 = vld [vmem:[%s1328_s5 + $0x40] sm:$0xff]  ;;  %v393_v37 = vld [vmem:[%s1328_s5 + $0x48] sm:$0xff] }
  0x2d   :  { %443 = vperm.xlu0 %998, %v405_v38   ;;  %438 = vperm.xlu1 %999, %v404_v39   ;;  %v394_v38 = vld [vmem:[%s1328_s5 + $0x50] sm:$0xff]  ;;  %v395_v39 = vld [vmem:[%s1328_s5 + $0x58] sm:$0xff] }
  0x31   :  { %433 = vperm.xlu0 %998, %v403_v40   ;;  %428 = vperm.xlu1 %999, %v402_v41   ;;  %v396_v40 = vld [vmem:[%s1328_s5 + $0x60] sm:$0xff]  ;;  %v397_v41 = vld [vmem:[%s1328_s5 + $0x68] sm:$0xff] }
  0x35   :  { %423 = vperm.xlu0 %998, %v401_v42   ;;  %418 = vperm.xlu1 %999, %v400_v43   ;;  %v398_v42 = vld [vmem:[%s1328_s5 + $0x70] sm:$0xff]  ;;  %v399_v43 = vld [vmem:[%s1328_s5 + $0x78] sm:$0xff] }
  0x82   :  { %v366_v53 = vpop.permute.xlu0 %365 }
  0x84   :  { %v356_v55 = vpop.permute.xlu1 %355 }
  0x86   :  { %v361_v60 = vpop.permute.xlu0 %360 }
  0x88   :  { %v351_v62 = vpop.permute.xlu1 %350 }
  0x8c   :  { %v346_v10 = vpop.permute.xlu0 %345  ;;  %v341_v14 = vpop.permute.xlu1 %340 }
  0x90   :  { %v336_v21 = vpop.permute.xlu0 %335  ;;  %v331_v24 = vpop.permute.xlu1 %330 }
  0xc4   :  { %v893_v45 = vpop.f32.mrf.mxu0 }
  0xc6   :  { %v148_v46 = vpop.f32.mrf.mxu0 }
  0xc7   :  { %v909_v47 = vpop.f32.mrf.mxu1 }
  0xc8   :  { %v896_v48 = vpop.f32.mrf.mxu0  ;;  %v287_v15 = vadd.f32 %v909_v47, %v893_v45 }
  0xc9   :  { %v281_v49 = vpop.f32.mrf.mxu1 }
  0xca   :  { %v158_v50 = vpop.f32.mrf.mxu0  ;;  %v282_v18 = vadd.f32 %v281_v49, %v148_v46  ;;  %v369_v22 = vadd.f32 %v336_v21, %v287_v15 }
  0xcb   :  { %v912_v51 = vpop.f32.mrf.mxu1 }
  0xcc   :  { %v899_v52 = vpop.f32.mrf.mxu0  ;;  %v297_v6 = vadd.f32 %v912_v51, %v896_v48  ;;  %v368_v25 = vadd.f32 %v331_v24, %v282_v18  ;;  %v377_v27 = vmax.f32 %v369_v22, 0.0  ;;  %v494_v51 = vpop.permute.xlu0 %493 }
  0xcd   :  { %v291_v54 = vpop.f32.mrf.mxu1 }
  0xce   :  { %v168_v56 = vpop.f32.mrf.mxu0  ;;  %v292_v11 = vadd.f32 %v291_v54, %v158_v50  ;;  %v371_v16 = vadd.f32 %v346_v10, %v297_v6  ;;  %v376_v28 = vmax.f32 %v368_v25, 0.0 }
  0xcf   :  { %v915_v57 = vpop.f32.mrf.mxu1 }
  0xd0   :  { %v902_v58 = vpop.f32.mrf.mxu0  ;;  %v307_v63 = vadd.f32 %v915_v57, %v899_v52  ;;  %v370_v19 = vadd.f32 %v341_v14, %v292_v11  ;;  %v379_v23 = vmax.f32 %v371_v16, 0.0 }
  0xd1   :  { %v301_v59 = vpop.f32.mrf.mxu1 }
  0xd2   :  { %v178_v1 = vpop.f32.mrf.mxu0  ;;  %v302_v3 = vadd.f32 %v301_v59, %v168_v56  ;;  %v373_v7 = vadd.f32 %v356_v55, %v307_v63  ;;  %v378_v26 = vmax.f32 %v370_v19, 0.0  ;;  %v484_v56 = vpop.permute.xlu0 %483 }
  0xd3   :  { %v918_v61 = vpop.f32.mrf.mxu1 }
  0xd4   :  { %v317_v0 = vadd.f32 %v918_v61, %v902_v58  ;;  %v372_v12 = vadd.f32 %v351_v62, %v302_v3  ;;  %v381_v17 = vmax.f32 %v373_v7, 0.0 }
  0xd5   :  { %v311_v2 = vpop.f32.mrf.mxu1 }
  0xd6   :  { %v375_v4 = vadd.f32 %v366_v53, %v317_v0  ;;  %v312_v5 = vadd.f32 %v311_v2, %v178_v1  ;;  %v380_v20 = vmax.f32 %v372_v12, 0.0  ;;  %v489_v53 = vpop.permute.xlu1 %488  ;;  %v474_v61 = vpop.permute.xlu0 %473 }
  0xd8   :  { %v383_v8 = vmax.f32 %v375_v4, 0.0  ;;  %v374_v9 = vadd.f32 %v361_v60, %v312_v5 }
  0xda   :  { %v382_v13 = vmax.f32 %v374_v9, 0.0  ;;  %919 = vmatprep.subr.mxu0 %v383_v8  ;;  %v479_v58 = vpop.permute.xlu1 %478  ;;  %v464_v3 = vpop.permute.xlu0 %463 }
  0xdb   :  { %920 = vmatpush3.msra.mxu0 %v383_v8 }
  0xdc   :  { %921 = vmatprep.subr.mxu0 %v382_v13 }
  0xdd   :  { %922 = vmatpush3.msra.mxu0 %v382_v13 }
  0xde   :  { %923 = vmatprep.subr.mxu0 %v381_v17  ;;  %v469_v63 = vpop.permute.xlu1 %468  ;;  %v454_v13 = vpop.permute.xlu0 %453 }
  0xdf   :  { %924 = vmatpush3.msra.mxu0 %v381_v17 }
  0xe0   :  { %925 = vmatprep.subr.mxu0 %v380_v20 }
  0xe1   :  { %926 = vmatpush3.msra.mxu0 %v380_v20 }
  0xe2   :  { %927 = vmatprep.subr.mxu0 %v379_v23  ;;  %v459_v8 = vpop.permute.xlu1 %458  ;;  %v444_v21 = vpop.permute.xlu0 %443 }
  0xe3   :  { %928 = vmatpush3.msra.mxu0 %v379_v23 }
  0xe4   :  { %929 = vmatprep.subr.mxu0 %v378_v26 }
  0xe5   :  { %930 = vmatpush3.msra.mxu0 %v378_v26 }
  0xe6   :  { %931 = vmatprep.subr.mxu0 %v377_v27  ;;  %v449_v16 = vpop.permute.xlu1 %448 }
  0xe7   :  { %932 = vmatpush3.msra.mxu0 %v377_v27 }
  0xe8   :  { %933 = vmatprep.subr.mxu0 %v376_v28 }
  0xe9   :  { %934 = vmatpush3.msra.mxu0 %v376_v28 }
  0xea   :  { %936 = vmatmul.mubr.msk.f32.vlgmr.msra.gmra.mxu0 %vm496_vm3, %v385_v29  ;;  %v439_v24 = vpop.permute.xlu1 %438  ;;  %v434_v29 = vpop.permute.xlu0 %433 }
  0xeb   :  { %938 = vmatprep.mubr.msk.f32.mxu0 %vm496_vm3, %v386_v30 }
  0xee   :  { %939 = vmatmul.mubr.msk.f32.gmra.mxu0 %vm496_vm3, %v387_v31 }
  0xef   :  { %941 = vmatprep.mubr.msk.f32.mxu0 %vm496_vm3, %v388_v32  ;;  %v429_v32 = vpop.permute.xlu1 %428 }
  0xf2   :  { %942 = vmatmul.mubr.msk.f32.gmra.mxu0 %vm496_vm3, %v389_v33 }
  0xf3   :  { %944 = vmatprep.mubr.msk.f32.mxu0 %vm496_vm3, %v390_v34 }
  0xf6   :  { %945 = vmatmul.mubr.msk.f32.gmra.mxu0 %vm496_vm3, %v391_v35 }
  0xf7   :  { %947 = vmatprep.mubr.msk.f32.mxu0 %vm496_vm3, %v392_v36 }
  0xfa   :  { %948 = vmatmul.mubr.msk.f32.gmra.mxu0 %vm496_vm3, %v393_v37  ;;  %v424_v37 = vpop.permute.xlu0 %423 }
  0xfb   :  { %950 = vmatprep.mubr.msk.f32.mxu0 %vm496_vm3, %v394_v38 }
  0xfe   :  { %951 = vmatmul.mubr.msk.f32.gmra.mxu0 %vm496_vm3, %v395_v39 }
  0xff   :  { %953 = vmatprep.mubr.msk.f32.mxu0 %vm496_vm3, %v396_v40  ;;  %v419_v40 = vpop.permute.xlu1 %418 }
 0x102   :  { %954 = vmatmul.mubr.msk.f32.gmra.mxu0 %vm496_vm3, %v397_v41 }
 0x103   :  { %956 = vmatprep.mubr.msk.f32.mxu0 %vm496_vm3, %v398_v42 }
 0x106   :  { %957 = vmatmul.mubr.msk.f32.gmra.mxu0 %vm496_vm3, %v399_v43 }
 0x1aa   :  { %v1287_v45 = vpop.f32.mrf.mxu0 }
 0x1ab   :  { %v617_v38 = vadd.f32 %v1287_v45, %v424_v37  ;;  %v706_v45 = vld [vmem:[%s1330_s7] sm:$0x1] }
 0x1ac   :  { %v1289_v46 = vpop.f32.mrf.mxu0 }
 0x1ad   :  { %v612_v41 = vadd.f32 %v1289_v46, %v419_v40  ;;  %v691_v43 = vmax.f32 %v617_v38, 0.0  ;;  %v708_v46 = vstv %s1331_s8 }
 0x1ae   :  { %v1291_v47 = vpop.f32.mrf.mxu0 }
 0x1af   :  { %v627_v33 = vadd.f32 %v1291_v47, %v434_v29  ;;  %v690_v47 = vmax.f32 %v612_v41, 0.0 }
 0x1b0   :  { %v1293_v48 = vpop.f32.mrf.mxu0 }
 0x1b1   :  { %v622_v35 = vadd.f32 %v1293_v48, %v429_v32  ;;  %v693_v39 = vmax.f32 %v627_v33, 0.0 }
 0x1b2   :  { %v943_v49 = vpop.f32.mrf.mxu0 }
 0x1b3   :  { %v637_v27 = vadd.f32 %v943_v49, %v444_v21  ;;  %v692_v42 = vmax.f32 %v622_v35, 0.0 }
 0x1b4   :  { %v631_v50 = vpop.f32.mrf.mxu0 }
 0x1b5   :  { %v632_v30 = vadd.f32 %v631_v50, %v439_v24  ;;  %v695_v34 = vmax.f32 %v637_v27, 0.0 }
 0x1b6   :  { %v946_v52 = vpop.f32.mrf.mxu0 }
 0x1b7   :  { %v647_v22 = vadd.f32 %v946_v52, %v454_v13  ;;  %v694_v36 = vmax.f32 %v632_v30, 0.0 }
 0x1b8   :  { %v641_v54 = vpop.f32.mrf.mxu0 }
 0x1b9   :  { %v642_v25 = vadd.f32 %v641_v54, %v449_v16  ;;  %v697_v28 = vmax.f32 %v647_v22, 0.0 }
 0x1ba   :  { %v949_v55 = vpop.f32.mrf.mxu0 }
 0x1bb   :  { %v657_v17 = vadd.f32 %v949_v55, %v464_v3  ;;  %v696_v31 = vmax.f32 %v642_v25, 0.0 }
 0x1bc   :  { %v651_v57 = vpop.f32.mrf.mxu0 }
 0x1bd   :  { %v652_v19 = vadd.f32 %v651_v57, %v459_v8  ;;  %v699_v23 = vmax.f32 %v657_v17, 0.0 }
 0x1be   :  { %v952_v59 = vpop.f32.mrf.mxu0 }
 0x1bf   :  { %v667_v11 = vadd.f32 %v952_v59, %v474_v61  ;;  %v698_v26 = vmax.f32 %v652_v19, 0.0 }
 0x1c0   :  { %v661_v60 = vpop.f32.mrf.mxu0 }
 0x1c1   :  { %v662_v14 = vadd.f32 %v661_v60, %v469_v63  ;;  %v701_v18 = vmax.f32 %v667_v11, 0.0 }
 0x1c2   :  { %v955_v62 = vpop.f32.mrf.mxu0 }
 0x1c3   :  { %v677_v5 = vadd.f32 %v955_v62, %v484_v56  ;;  %v700_v20 = vmax.f32 %v662_v14, 0.0 }
 0x1c4   :  { %v671_v0 = vpop.f32.mrf.mxu0 }
 0x1c5   :  { %v672_v9 = vadd.f32 %v671_v0, %v479_v58  ;;  %v703_v12 = vmax.f32 %v677_v5, 0.0 }
 0x1c6   :  { %v958_v1 = vpop.f32.mrf.mxu0 }
 0x1c7   :  { %v687_v2 = vadd.f32 %v958_v1, %v494_v51  ;;  %v702_v15 = vmax.f32 %v672_v9, 0.0 }
 0x1c8   :  { %v681_v4 = vpop.f32.mrf.mxu0 }
 0x1c9   :  { %v705_v6 = vmax.f32 %v687_v2, 0.0  ;;  %v682_v7 = vadd.f32 %v681_v4, %v489_v53 }
 0x1cb   :  { %v704_v10 = vmax.f32 %v682_v7, 0.0  ;;  %960 = vmatpush3.msra.mxu1 %v705_v6 }
 0x1cc   :  { %961 = vmatprep.subr.mxu1 %v1023_v44 }
 0x1cd   :  { %962 = vmatpush3.msra.mxu1 %v704_v10 }
 0x1ce   :  { %963 = vmatprep.subr.mxu1 %v1023_v44 }
 0x1cf   :  { %964 = vmatpush3.msra.mxu1 %v703_v12 }
 0x1d0   :  { %965 = vmatprep.subr.mxu1 %v1023_v44 }
 0x1d1   :  { %966 = vmatpush3.msra.mxu1 %v702_v15 }
 0x1d2   :  { %967 = vmatprep.subr.mxu1 %v1023_v44 }
 0x1d3   :  { %968 = vmatpush3.msra.mxu1 %v701_v18 }
 0x1d4   :  { %969 = vmatprep.subr.mxu1 %v1023_v44 }
 0x1d5   :  { %970 = vmatpush3.msra.mxu1 %v700_v20 }
 0x1d6   :  { %971 = vmatprep.subr.mxu1 %v1023_v44 }
 0x1d7   :  { %972 = vmatpush3.msra.mxu1 %v699_v23 }
 0x1d8   :  { %973 = vmatprep.subr.mxu1 %v1023_v44 }
 0x1d9   :  { %974 = vmatpush3.msra.mxu1 %v698_v26 }
 0x1da   :  { %975 = vmatprep.subr.mxu1 %v1023_v44 }
 0x1db   :  { %976 = vmatpush3.msra.mxu1 %v697_v28 }
 0x1dc   :  { %977 = vmatprep.subr.mxu1 %v1023_v44 }
 0x1dd   :  { %978 = vmatpush3.msra.mxu1 %v696_v31 }
 0x1de   :  { %979 = vmatprep.subr.mxu1 %v1023_v44 }
 0x1df   :  { %980 = vmatpush3.msra.mxu1 %v695_v34 }
 0x1e0   :  { %981 = vmatprep.subr.mxu1 %v1023_v44 }
 0x1e1   :  { %982 = vmatpush3.msra.mxu1 %v694_v36 }
 0x1e2   :  { %983 = vmatprep.subr.mxu1 %v1023_v44 }
 0x1e3   :  { %984 = vmatpush3.msra.mxu1 %v693_v39 }
 0x1e4   :  { %985 = vmatprep.subr.mxu1 %v1023_v44 }
 0x1e5   :  { %986 = vmatpush3.msra.mxu1 %v692_v42 }
 0x1e6   :  { %987 = vmatprep.subr.mxu1 %v1023_v44 }
 0x1e7   :  { %988 = vmatpush3.msra.mxu1 %v691_v43 }
 0x1e8   :  { %989 = vmatprep.subr.mxu1 %v1023_v44 }
 0x1e9   :  { %990 = vmatpush3.msra.mxu1 %v690_v47 }
 0x1ea   :  { %992 = vmatmul.mubr.f32.vlgmr.msra.gmra.mxu1 %v706_v45 }
 0x2aa   :  { %v775_v48 = vpop.f32.mrf.mxu1 }
 0x2ab   :  { %v776_v49 = vadd.f32 %v775_v48, %v708_v46 }
 0x2ac   :  { %v993_v50 = vpop.f32.mrf.mxu1 }
 0x2ad   :  { %780 = vst.msk [vmem:[#allocation3] sm:$0x1] %vm779_vm5, %v776_v49 }
 0x2ae   :  { %1011 = shalt.err (!%p1008_p4)
}
 0x2af   :  { %790 = dma.vmem_to_hbm [thread:$0]  %s788_s26, 16, %s1332_s9, [#allocation4]  }
 0x2b0   :  { %1020 = dma.done.wait [#allocation4], 16  }
 0x2b1   :  { %1021 = vsyncadd [#allocation4], 4294967280 }
 0x2b2   :  { %794 = vsyncpa [#allocation4], 1 }

</bundles_post_ra>
